<compile_context>
chip_gen: v5e
topology: v5e:2x2
jax: 0.10.0
libtpu: 0.0.40
codegen_flags: <defaults>
</compile_context>

<pallas_src>
import functools

import jax
import jax.numpy as jnp
from jax import lax
from jax.experimental import pallas as pl
from jax.experimental.pallas import tpu as pltpu


def _round_up(x, m):
    return ((x + m - 1) // m) * m


def sublayer_ffn_kernel(x_ref, gamma_ref, beta_ref, w1_ref, b1_ref, w2_ref,
                        b2_ref, o_ref, xn_ref, acc_ref, *, eps, d_true,
                        d_padded, n_sub, tf_sub):
    k = pl.program_id(1)

    # Phase 0 (once per row tile): LayerNorm into scratch (stored in the weight
    # dtype so the per-k body never re-casts), zero the accumulator.
    @pl.when(k == 0)
    def _():
        x = x_ref[...].astype(jnp.float32)
        if d_padded:
            # d_model is zero-padded to a multiple of 128 for lane-dense IO;
            # padded columns are zero, so sums over the padded tile equal the
            # true sums -> normalize by the TRUE feature count.
            s = jnp.sum(x, axis=-1, keepdims=True)
            ss = jnp.sum(x * x, axis=-1, keepdims=True)
            mu = s * (1.0 / d_true)
            var = jnp.maximum(ss * (1.0 / d_true) - mu * mu, 0.0)
        else:
            mu = jnp.mean(x, axis=-1, keepdims=True)
            var = jnp.mean(jnp.square(x - mu), axis=-1, keepdims=True)
        xn = (x - mu) * lax.rsqrt(var + eps)
        xn = (xn * gamma_ref[...].astype(jnp.float32)
              + beta_ref[...].astype(jnp.float32))
        xn_ref[...] = xn.astype(xn_ref.dtype)
        acc_ref[...] = jnp.zeros_like(acc_ref)

    # FFN over one d_ff chunk, split into n_sub sub-tiles so matmul1 of
    # sub-tile j+1 overlaps the relu/bias VPU work of sub-tile j.
    # (chunking over d_ff is exact: bias/relu act per hidden unit.)
    xn = xn_ref[...]
    for j in range(n_sub):
        lo, hi = j * tf_sub, (j + 1) * tf_sub
        h = jnp.dot(xn, w1_ref[:, lo:hi], preferred_element_type=jnp.float32)
        h = jnp.maximum(h + b1_ref[:, lo:hi].astype(jnp.float32), 0.0)
        acc_ref[...] += jnp.dot(h.astype(w2_ref.dtype), w2_ref[lo:hi, :],
                                preferred_element_type=jnp.float32)

    # Finalize: second bias + residual connection.
    @pl.when(k == pl.num_programs(1) - 1)
    def _():
        # TODO(synk): training-mode dropout (pltpu.prng_* mask/scale) not applied;
        # eval-mode dropout is the identity, which is what is implemented here.
        y = acc_ref[...] + b2_ref[...].astype(jnp.float32)
        o_ref[...] = (x_ref[...].astype(jnp.float32) + y).astype(o_ref.dtype)


def _vmem_need(tm, tf, d_model_pad, wbuf, w_item, x_item, n_sub):
    tf_sub = tf // n_sub
    chunk = (2 * d_model_pad * tf + tf) * w_item        # W1 + W2 + b1 block
    return (wbuf * chunk
            + 3 * d_model_pad * 4                       # gamma, beta, b2 (resident)
            + 4 * tm * d_model_pad * x_item             # x / out double buffers
            + tm * d_model_pad * w_item                 # xn scratch (weight dtype)
            + tm * d_model_pad * 4                      # f32 accumulator scratch
            + 2 * tm * tf_sub * 4)                      # h sub-tile temporaries


def sublayer_connection_ffn(x, gamma, beta, w1, b1, w2, b2, *,
                            eps=1e-12, tm=None, tf=None, vmem_limit_bytes=None):
    """x: [B, S, d_model]; w1: [d_model, d_ff]; w2: [d_ff, d_model] (pre-transposed)."""
    B, S, d_model = x.shape
    d_ff = w1.shape[1]
    N = B * S

    w_item = jnp.dtype(w1.dtype).itemsize
    x_item = jnp.dtype(x.dtype).itemsize

    # --- per-generation VMEM budget (v5e/v6e: 128 MiB per TC, v7x: 64 MiB).
    try:
        vmem_cap = int(pltpu.get_tpu_info().vmem_capacity_bytes)
    except Exception:
        vmem_cap = 64 << 20                       # conservative (v7x-sized) default
    scoped_cap = int(0.75 * vmem_cap)             # ~48 MiB on v7x, ~96 MiB on v5e/v6e

    # --- lane-dense IO: pad d_model to a multiple of 128 (padded gamma/beta/W/b
    # columns are zero, so padded output columns are exactly zero and sliced off).
    d_model_pad = _round_up(d_model, 128)

    # --- weight residency: keep W1/W2/b1 fully resident (single HBM pass)
    # whenever they fit roughly half the scoped budget; otherwise chunk d_ff.
    full_w_bytes = (2 * d_model_pad * d_ff + d_ff) * w_item
    if tf is None:
        tf = d_ff if full_w_bytes <= int(0.55 * scoped_cap) else 1024
    tf = min(tf, d_ff)
    if tf < d_ff:
        tf = max(128, (tf // 128) * 128)          # chunked blocks need 128-lane width
    d_ff_pad = _round_up(d_ff, tf)
    num_k = d_ff_pad // tf

    # --- row tiling: when weights are chunked they are re-streamed once per row
    # tile, so go bigger (tm=512) to amortize the weight HBM traffic.
    if tm is None:
        tm = 512 if num_k > 1 else 256
    tm_eff = min(tm, _round_up(N, 8))

    # --- in-step MXU/VPU overlap: 2 sub-tiles per chunk when both halves can
    # stay 128-lane aligned.
    n_sub = 2 if tf % 256 == 0 else 1
    tf_sub = tf // n_sub

    # --- weight-chunk pipeline depth (deeper buffering hides chunk DMA latency).
    if num_k == 1:
        wbuf, w_mode = 1, pl.Buffered(1)          # resident, fetched exactly once
    elif (num_k >= 3 and
          _vmem_need(tm_eff, tf, d_model_pad, 3, w_item, x_item, n_sub)
          <= scoped_cap):
        wbuf, w_mode = 3, pl.Buffered(3)
    else:
        wbuf, w_mode = 2, None                    # default double buffering

    # --- shrink row tile if the working set still exceeds the scoped budget.
    while (tm_eff > 8 and
           _vmem_need(tm_eff, tf, d_model_pad, wbuf, w_item, x_item, n_sub)
           > scoped_cap):
        tm_eff = max(8, (tm_eff // 2 // 8) * 8)

    N_pad = _round_up(N, tm_eff)

    # --- padding (zero rows / hidden units / features contribute exactly 0).
    x2 = x.reshape(N, d_model)
    if N_pad != N or d_model_pad != d_model:
        x2 = jnp.pad(x2, ((0, N_pad - N), (0, d_model_pad - d_model)))
    if d_model_pad != d_model:
        gamma = jnp.pad(gamma, ((0, d_model_pad - d_model),))
        beta = jnp.pad(beta, ((0, d_model_pad - d_model),))
        b2 = jnp.pad(b2, ((0, d_model_pad - d_model),))
        w1 = jnp.pad(w1, ((0, d_model_pad - d_model), (0, 0)))
        w2 = jnp.pad(w2, ((0, 0), (0, d_model_pad - d_model)))
    if d_ff_pad != d_ff:
        w1 = jnp.pad(w1, ((0, 0), (0, d_ff_pad - d_ff)))
        w2 = jnp.pad(w2, ((0, d_ff_pad - d_ff), (0, 0)))
        b1 = jnp.pad(b1, ((0, d_ff_pad - d_ff),))

    gamma2 = gamma.reshape(1, d_model_pad)
    beta2 = beta.reshape(1, d_model_pad)
    b1_2 = b1.reshape(1, d_ff_pad)
    b2_2 = b2.reshape(1, d_model_pad)

    resident = pl.Buffered(1)                     # grid-invariant operands
    grid = (N_pad // tm_eff, num_k)
    in_specs = [
        pl.BlockSpec((tm_eff, d_model_pad), lambda i, k: (i, 0)),                     # x rows
        pl.BlockSpec((1, d_model_pad), lambda i, k: (0, 0), pipeline_mode=resident),  # gamma
        pl.BlockSpec((1, d_model_pad), lambda i, k: (0, 0), pipeline_mode=resident),  # beta
        pl.BlockSpec((d_model_pad, tf), lambda i, k: (0, k), pipeline_mode=w_mode),   # W1 chunk
        pl.BlockSpec((1, tf), lambda i, k: (0, k), pipeline_mode=w_mode),             # b1 chunk
        pl.BlockSpec((tf, d_model_pad), lambda i, k: (k, 0), pipeline_mode=w_mode),   # W2 chunk
        pl.BlockSpec((1, d_model_pad), lambda i, k: (0, 0), pipeline_mode=resident),  # b2
    ]
    out_spec = pl.BlockSpec((tm_eff, d_model_pad), lambda i, k: (i, 0))

    if vmem_limit_bytes is None:
        need = _vmem_need(tm_eff, tf, d_model_pad, wbuf, w_item, x_item, n_sub)
        vmem_limit_bytes = min(scoped_cap,
                               max(32 << 20, int(1.3 * need) + (2 << 20)))

    # Honest roofline hint: chunked weights are re-streamed once per row tile.
    weight_passes = (N_pad // tm_eff) if num_k > 1 else 1
    cost = pl.CostEstimate(
        flops=4 * N_pad * d_model_pad * d_ff_pad + 10 * N_pad * d_model_pad,
        transcendentals=N_pad,
        bytes_accessed=(2 * N_pad * d_model_pad * x_item
                        + weight_passes * (w1.size + w2.size + b1_2.size) * w_item
                        + 3 * d_model_pad * 4))

    out = pl.pallas_call(
        functools.partial(sublayer_ffn_kernel, eps=eps, d_true=float(d_model),
                          d_padded=(d_model_pad != d_model),
                          n_sub=n_sub, tf_sub=tf_sub),
        out_shape=jax.ShapeDtypeStruct((N_pad, d_model_pad), x.dtype),
        grid_spec=pltpu.PrefetchScalarGridSpec(
            num_scalar_prefetch=0,
            grid=grid,
            in_specs=in_specs,
            out_specs=out_spec,
            scratch_shapes=[
                pltpu.VMEM((tm_eff, d_model_pad), w1.dtype),     # LN(x) cache (weight dtype)
                pltpu.VMEM((tm_eff, d_model_pad), jnp.float32),  # FFN accumulator
            ]),
        compiler_params=pltpu.CompilerParams(
            dimension_semantics=("parallel", "arbitrary"),
            vmem_limit_bytes=vmem_limit_bytes),
        cost_estimate=cost,
    )(x2, gamma2, beta2, w1, b1_2, w2, b2_2)

    return out[:N, :d_model].reshape(B, S, d_model)


def sublayer_connection_reference(x, gamma, beta, w1, b1, w2, b2, eps=1e-12):
    mu = jnp.mean(x, axis=-1, keepdims=True)
    var = jnp.mean(jnp.square(x - mu), axis=-1, keepdims=True)
    xn = (x - mu) / jnp.sqrt(var + eps) * gamma + beta
    h = jnp.maximum(jnp.einsum("bsd,df->bsf", xn, w1) + b1, 0.0)
    y = jnp.einsum("bsf,fd->bsd", h, w2) + b2
    return x + y   # eval-mode dropout == identity


if __name__ == "__main__":
    key = jax.random.PRNGKey(0)
    kx, kg, kb, k1, kb1, k2, kb2 = jax.random.split(key, 7)

    # Small demo shapes implied by the module (d_model=32 exercises the
    # d_model -> 128 lane-padding path; weights resident, num_k == 1).
    B, S, d_model, d_ff = 2, 8, 32, 64
    x = jax.random.normal(kx, (B, S, d_model), dtype=jnp.float32)
    gamma = 1.0 + 0.1 * jax.random.normal(kg, (d_model,), dtype=jnp.float32)
    beta = 0.1 * jax.random.normal(kb, (d_model,), dtype=jnp.float32)
    w1 = 0.1 * jax.random.normal(k1, (d_model, d_ff), dtype=jnp.float32)
    b1 = 0.1 * jax.random.normal(kb1, (d_ff,), dtype=jnp.float32)
    w2 = 0.1 * jax.random.normal(k2, (d_ff, d_model), dtype=jnp.float32)
    b2 = 0.1 * jax.random.normal(kb2, (d_model,), dtype=jnp.float32)

    y_ref = sublayer_connection_reference(x, gamma, beta, w1, b1, w2, b2)

    # f32 path (resident weights)
    y = jax.block_until_ready(
        sublayer_connection_ffn(x, gamma, beta, w1, b1, w2, b2))
    assert y.shape == (B, S, d_model)
    assert jnp.allclose(y, y_ref, atol=1e-4, rtol=1e-4), "f32 mismatch vs reference"

    # bf16-weight path (MXU bf16 on all generations; LN / bias / residual in f32).
    y_bf16 = jax.block_until_ready(sublayer_connection_ffn(
        x, gamma, beta,
        w1.astype(jnp.bfloat16), b1.astype(jnp.bfloat16),
        w2.astype(jnp.bfloat16), b2.astype(jnp.bfloat16)))
    assert jnp.allclose(y_bf16, y_ref, atol=5e-2, rtol=5e-2), "bf16 mismatch vs reference"

    # Chunked-d_ff path (num_k > 1) + in-step sub-tiling (n_sub == 2), forced via tf.
    B2, S2, dm2, dff2 = 2, 16, 128, 512
    k3, k4, k5, k6, k7, k8, k9 = jax.random.split(jax.random.PRNGKey(1), 7)
    x_c = jax.random.normal(k3, (B2, S2, dm2), dtype=jnp.float32)
    g_c = 1.0 + 0.1 * jax.random.normal(k4, (dm2,), dtype=jnp.float32)
    be_c = 0.1 * jax.random.normal(k5, (dm2,), dtype=jnp.float32)
    w1_c = 0.1 * jax.random.normal(k6, (dm2, dff2), dtype=jnp.float32)
    b1_c = 0.1 * jax.random.normal(k7, (dff2,), dtype=jnp.float32)
    w2_c = 0.1 * jax.random.normal(k8, (dff2, dm2), dtype=jnp.float32)
    b2_c = 0.1 * jax.random.normal(k9, (dm2,), dtype=jnp.float32)
    y_c_ref = sublayer_connection_reference(x_c, g_c, be_c, w1_c, b1_c, w2_c, b2_c)
    y_c = jax.block_until_ready(sublayer_connection_ffn(
        x_c, g_c, be_c, w1_c, b1_c, w2_c, b2_c, tf=256))
    assert jnp.allclose(y_c, y_c_ref, atol=5e-3, rtol=5e-3), "chunked path mismatch"

    print("KERNEL_OK")
</pallas_src>

<mosaic_0001>
module attributes {stable_mosaic.version = 11 : i64} {
  func.func @sublayer_ffn_kernel(%arg0: i32, %arg1: i32, %arg2: memref<16x128xf32, #tpu.memory_space<vmem>>, %arg3: memref<1x128xf32, #tpu.memory_space<vmem>>, %arg4: memref<1x128xf32, #tpu.memory_space<vmem>>, %arg5: memref<128x64xf32, #tpu.memory_space<vmem>>, %arg6: memref<1x64xf32, #tpu.memory_space<vmem>>, %arg7: memref<64x128xf32, #tpu.memory_space<vmem>>, %arg8: memref<1x128xf32, #tpu.memory_space<vmem>>, %arg9: memref<16x128xf32, #tpu.memory_space<vmem>>, %arg10: memref<16x128xf32, #tpu.memory_space<vmem>>, %arg11: memref<16x128xf32, #tpu.memory_space<vmem>>) attributes {dimension_semantics = [#tpu.dimension_semantics<parallel>, #tpu.dimension_semantics<arbitrary>], iteration_bounds = array<i64: 1, 1>, scalar_prefetch = 0 : i64, scratch_operands = 2 : i64, tpu.core_type = #tpu.core_type<tc>, window_params = [{transform_indices = @transform_0, window_bounds = array<i64: 16, 128>}, {pipeline_mode = #tpu.pipeline_mode<synchronous>, transform_indices = @transform_1, window_bounds = array<i64: 1, 128>}, {pipeline_mode = #tpu.pipeline_mode<synchronous>, transform_indices = @transform_2, window_bounds = array<i64: 1, 128>}, {pipeline_mode = #tpu.pipeline_mode<synchronous>, transform_indices = @transform_3, window_bounds = array<i64: 128, 64>}, {pipeline_mode = #tpu.pipeline_mode<synchronous>, transform_indices = @transform_4, window_bounds = array<i64: 1, 64>}, {pipeline_mode = #tpu.pipeline_mode<synchronous>, transform_indices = @transform_5, window_bounds = array<i64: 64, 128>}, {pipeline_mode = #tpu.pipeline_mode<synchronous>, transform_indices = @transform_6, window_bounds = array<i64: 1, 128>}, {transform_indices = @transform_7, window_bounds = array<i64: 16, 128>}]} {
    %c0_i32 = arith.constant 0 : i32
    %0 = arith.cmpi eq, %arg1, %c0_i32 : i32
    %1 = arith.extui %0 : i1 to i32
    %c0_i32_0 = arith.constant 0 : i32
    %2 = arith.cmpi ne, %1, %c0_i32_0 : i32
    scf.if %2 {
      %c0_16 = arith.constant 0 : index
      %c0_17 = arith.constant 0 : index
      %19 = vector.load %arg2[%c0_16, %c0_17] : memref<16x128xf32, #tpu.memory_space<vmem>>, vector<16x128xf32>
      %cst_18 = arith.constant dense<0.000000e+00> : vector<16xf32>
      %20 = vector.multi_reduction <add>, %19, %cst_18 [1] : vector<16x128xf32> to vector<16xf32>
      %21 = vector.shape_cast %20 : vector<16xf32> to vector<16x1xf32>
      %22 = arith.mulf %19, %19 : vector<16x128xf32>
      %cst_19 = arith.constant dense<0.000000e+00> : vector<16xf32>
      %23 = vector.multi_reduction <add>, %22, %cst_19 [1] : vector<16x128xf32> to vector<16xf32>
      %24 = vector.shape_cast %23 : vector<16xf32> to vector<16x1xf32>
      %cst_20 = arith.constant 3.125000e-02 : f32
      %25 = vector.broadcast %cst_20 : f32 to vector<16x1xf32>
      %26 = arith.mulf %21, %25 : vector<16x1xf32>
      %cst_21 = arith.constant 3.125000e-02 : f32
      %27 = vector.broadcast %cst_21 : f32 to vector<16x1xf32>
      %28 = arith.mulf %24, %27 : vector<16x1xf32>
      %29 = arith.mulf %26, %26 : vector<16x1xf32>
      %30 = arith.subf %28, %29 : vector<16x1xf32>
      %cst_22 = arith.constant 0.000000e+00 : f32
      %31 = vector.broadcast %cst_22 : f32 to vector<16x1xf32>
      %32 = arith.maximumf %30, %31 : vector<16x1xf32>
      %33 = vector.broadcast %26 : vector<16x1xf32> to vector<16x128xf32>
      %34 = arith.subf %19, %33 : vector<16x128xf32>
      %cst_23 = arith.constant 9.99999996E-13 : f32
      %35 = vector.broadcast %cst_23 : f32 to vector<16x1xf32>
      %36 = arith.addf %32, %35 : vector<16x1xf32>
      %37 = math.rsqrt %36 : vector<16x1xf32>
      %38 = vector.broadcast %37 : vector<16x1xf32> to vector<16x128xf32>
      %39 = arith.mulf %34, %38 : vector<16x128xf32>
      %c0_24 = arith.constant 0 : index
      %c0_25 = arith.constant 0 : index
      %40 = vector.load %arg3[%c0_24, %c0_25] : memref<1x128xf32, #tpu.memory_space<vmem>>, vector<1x128xf32>
      %41 = vector.broadcast %40 : vector<1x128xf32> to vector<16x128xf32>
      %42 = arith.mulf %39, %41 : vector<16x128xf32>
      %c0_26 = arith.constant 0 : index
      %c0_27 = arith.constant 0 : index
      %43 = vector.load %arg4[%c0_26, %c0_27] : memref<1x128xf32, #tpu.memory_space<vmem>>, vector<1x128xf32>
      %44 = vector.broadcast %43 : vector<1x128xf32> to vector<16x128xf32>
      %45 = arith.addf %42, %44 : vector<16x128xf32>
      %c0_28 = arith.constant 0 : index
      %c0_29 = arith.constant 0 : index
      %46 = vector.load %arg10[%c0_28, %c0_29] : memref<16x128xf32, #tpu.memory_space<vmem>>, vector<16x128xf32>
      tpu.vector_store %arg10[%c0_28, %c0_29], %45 {strides = array<i32>} : memref<16x128xf32, #tpu.memory_space<vmem>>, vector<16x128xf32>,
      %cst_30 = arith.constant 0.000000e+00 : f32
      %47 = vector.broadcast %cst_30 : f32 to vector<16x128xf32>
      %c0_31 = arith.constant 0 : index
      %c0_32 = arith.constant 0 : index
      %48 = vector.load %arg11[%c0_31, %c0_32] : memref<16x128xf32, #tpu.memory_space<vmem>>, vector<16x128xf32>
      tpu.vector_store %arg11[%c0_31, %c0_32], %47 {strides = array<i32>} : memref<16x128xf32, #tpu.memory_space<vmem>>, vector<16x128xf32>,
    } else {
    }
    %c0 = arith.constant 0 : index
    %c0_1 = arith.constant 0 : index
    %3 = vector.load %arg10[%c0, %c0_1] : memref<16x128xf32, #tpu.memory_space<vmem>>, vector<16x128xf32>
    %c0_2 = arith.constant 0 : index
    %c0_3 = arith.constant 0 : index
    %4 = vector.load %arg5[%c0_2, %c0_3] : memref<128x64xf32, #tpu.memory_space<vmem>>, vector<128x64xf32>
    %cst = arith.constant dense<0.000000e+00> : vector<16x64xf32>
    %5 = tpu.matmul %3, %4, %cst {dimension_numbers = #tpu.dot_dimension_numbers<[1], [0], [0], [1], [0, 0, 1, 1], [], []>} : vector<16x128xf32>, vector<128x64xf32>, vector<16x64xf32> -> vector<16x64xf32>
    %c0_4 = arith.constant 0 : index
    %c0_5 = arith.constant 0 : index
    %6 = vector.load %arg6[%c0_4, %c0_5] : memref<1x64xf32, #tpu.memory_space<vmem>>, vector<1x64xf32>
    %7 = vector.broadcast %6 : vector<1x64xf32> to vector<16x64xf32>
    %8 = arith.addf %5, %7 : vector<16x64xf32>
    %cst_6 = arith.constant 0.000000e+00 : f32
    %9 = vector.broadcast %cst_6 : f32 to vector<16x64xf32>
    %10 = arith.maximumf %8, %9 : vector<16x64xf32>
    %c0_7 = arith.constant 0 : index
    %c0_8 = arith.constant 0 : index
    %11 = vector.load %arg11[%c0_7, %c0_8] : memref<16x128xf32, #tpu.memory_space<vmem>>, vector<16x128xf32>
    %c0_9 = arith.constant 0 : index
    %c0_10 = arith.constant 0 : index
    %12 = vector.load %arg7[%c0_9, %c0_10] : memref<64x128xf32, #tpu.memory_space<vmem>>, vector<64x128xf32>
    %cst_11 = arith.constant dense<0.000000e+00> : vector<16x128xf32>
    %13 = tpu.matmul %10, %12, %cst_11 {dimension_numbers = #tpu.dot_dimension_numbers<[1], [0], [0], [1], [0, 0, 1, 1], [], []>} : vector<16x64xf32>, vector<64x128xf32>, vector<16x128xf32> -> vector<16x128xf32>
    %14 = arith.addf %11, %13 : vector<16x128xf32>
    %c0_12 = arith.constant 0 : index
    %c0_13 = arith.constant 0 : index
    %15 = vector.load %arg11[%c0_12, %c0_13] : memref<16x128xf32, #tpu.memory_space<vmem>>, vector<16x128xf32>
    tpu.vector_store %arg11[%c0_12, %c0_13], %14 {strides = array<i32>} : memref<16x128xf32, #tpu.memory_space<vmem>>, vector<16x128xf32>,
    %c0_i32_14 = arith.constant 0 : i32
    %16 = arith.cmpi eq, %arg1, %c0_i32_14 : i32
    %17 = arith.extui %16 : i1 to i32
    %c0_i32_15 = arith.constant 0 : i32
    %18 = arith.cmpi ne, %17, %c0_i32_15 : i32
    scf.if %18 {
      %c0_16 = arith.constant 0 : index
      %c0_17 = arith.constant 0 : index
      %19 = vector.load %arg11[%c0_16, %c0_17] : memref<16x128xf32, #tpu.memory_space<vmem>>, vector<16x128xf32>
      %c0_18 = arith.constant 0 : index
      %c0_19 = arith.constant 0 : index
      %20 = vector.load %arg8[%c0_18, %c0_19] : memref<1x128xf32, #tpu.memory_space<vmem>>, vector<1x128xf32>
      %21 = vector.broadcast %20 : vector<1x128xf32> to vector<16x128xf32>
      %22 = arith.addf %19, %21 : vector<16x128xf32>
      %c0_20 = arith.constant 0 : index
      %c0_21 = arith.constant 0 : index
      %23 = vector.load %arg2[%c0_20, %c0_21] : memref<16x128xf32, #tpu.memory_space<vmem>>, vector<16x128xf32>
      %24 = arith.addf %23, %22 : vector<16x128xf32>
      %c0_22 = arith.constant 0 : index
      %c0_23 = arith.constant 0 : index
      %25 = vector.load %arg9[%c0_22, %c0_23] : memref<16x128xf32, #tpu.memory_space<vmem>>, vector<16x128xf32>
      tpu.vector_store %arg9[%c0_22, %c0_23], %24 {strides = array<i32>} : memref<16x128xf32, #tpu.memory_space<vmem>>, vector<16x128xf32>,
    } else {
    }
    return
  }
  func.func @transform_0(%arg0: i32, %arg1: i32) -> (i32, i32) {
    %c0_i32 = arith.constant 0 : i32
    %c0_i32_0 = arith.constant 0 : i32
    return %arg0, %c0_i32 : i32, i32
  }
  func.func @transform_1(%arg0: i32, %arg1: i32) -> (i32, i32) {
    %c0_i32 = arith.constant 0 : i32
    %c0_i32_0 = arith.constant 0 : i32
    %c0_i32_1 = arith.constant 0 : i32
    return %c0_i32, %c0_i32_0 : i32, i32
  }
  func.func @transform_2(%arg0: i32, %arg1: i32) -> (i32, i32) {
    %c0_i32 = arith.constant 0 : i32
    %c0_i32_0 = arith.constant 0 : i32
    %c0_i32_1 = arith.constant 0 : i32
    return %c0_i32, %c0_i32_0 : i32, i32
  }
  func.func @transform_3(%arg0: i32, %arg1: i32) -> (i32, i32) {
    %c0_i32 = arith.constant 0 : i32
    %c0_i32_0 = arith.constant 0 : i32
    return %c0_i32, %arg1 : i32, i32
  }
  func.func @transform_4(%arg0: i32, %arg1: i32) -> (i32, i32) {
    %c0_i32 = arith.constant 0 : i32
    %c0_i32_0 = arith.constant 0 : i32
    return %c0_i32, %arg1 : i32, i32
  }
  func.func @transform_5(%arg0: i32, %arg1: i32) -> (i32, i32) {
    %c0_i32 = arith.constant 0 : i32
    %c0_i32_0 = arith.constant 0 : i32
    return %arg1, %c0_i32 : i32, i32
  }
  func.func @transform_6(%arg0: i32, %arg1: i32) -> (i32, i32) {
    %c0_i32 = arith.constant 0 : i32
    %c0_i32_0 = arith.constant 0 : i32
    %c0_i32_1 = arith.constant 0 : i32
    return %c0_i32, %c0_i32_0 : i32, i32
  }
  func.func @transform_7(%arg0: i32, %arg1: i32) -> (i32, i32) {
    %c0_i32 = arith.constant 0 : i32
    %c0_i32_0 = arith.constant 0 : i32
    return %arg0, %c0_i32 : i32, i32
  }
}

</mosaic_0001>

<bundles_post_ra>
// kernel: tpu_custom_call.1
= control target key start
LH: loop header
LB: loop body
LE: loop exit
PB: predicated region body
PF: predicated region fallthrough
CT: control target
= control target key end

     0   :  { %s426_s0 = inlined_call_operand.vmem [shape: f32[16,128], index: 0, kind: input, shape index: {}]   ;;  %s427_s1 = inlined_call_operand.vmem [shape: f32[1,128], index: 1, kind: input, shape index: {}]   ;;  %s428_s2 = inlined_call_operand.vmem [shape: f32[1,128], index: 2, kind: input, shape index: {}]   ;;  %s429_s3 = inlined_call_operand.vmem [shape: f32[128,64], index: 3, kind: input, shape index: {}]   ;;  %s430_s4 = inlined_call_operand.vmem [shape: f32[1,64], index: 4, kind: input, shape index: {}]   ;;  %s431_s5 = inlined_call_operand.vmem [shape: f32[64,128], index: 5, kind: input, shape index: {}]   ;;  %s432_s6 = inlined_call_operand.vmem [shape: f32[1,128], index: 6, kind: input, shape index: {}]   ;;  %s433_s7 = inlined_call_operand.hbm [shape: f32[16,128], index: 7, kind: output, shape index: {}]  }
   0x1   :  { %v322_v0 = vld [vmem:[%s426_s0] sm:$0xff] }
   0x2   :  { %33 = vadd.xlane.f32.xlu0 %v322_v0  ;;  %v37_v1 = vmul.f32 %v322_v0, %v322_v0 }
   0x3   :  { %12 = vsyncpa [#allocation5], 0  ;;  %v330_v2 = vld [vmem:[%s426_s0 + $0x8] sm:$0xff]  ;;  %v112_v4 = vld [vmem:[%s429_s3 + $0x78] sm:$0xff]  ;;  %vm152_vm6 = vcmask 523264   ;;  %s209_s11 = sshll.u32 %s433_s7, 4  ;;  %s210_s11 = int_to_ptr.hbm [resolvable:$true] %s209_s11 }
   0x4   :  { %39 = vadd.xlane.f32.xlu1 %v37_v1  ;;  %v38_v3 = vmul.f32 %v330_v2, %v330_v2  ;;  %117 = vmatpush.msra.mxu0 %v112_v4  ;;  %v111_v5 = vld [vmem:[%s429_s3 + $0x70] sm:$0xff]  ;;  %v110_v6 = vld [vmem:[%s429_s3 + $0x68] sm:$0xff]  ;;  %v109_v7 = vld [vmem:[%s429_s3 + $0x60] sm:$0xff]  ;;  %s277_s12 = smov 128  }
   0x5   :  { %223 = vmatpush.msra.mxu2 %v112_v4  ;;  %v108_v8 = vld [vmem:[%s429_s3 + $0x58] sm:$0xff]  ;;  %v107_v9 = vld [vmem:[%s429_s3 + $0x50] sm:$0xff]  ;;  %v106_v10 = vld [vmem:[%s429_s3 + $0x48] sm:$0xff] }
   0x6   :  { %118 = vmatpush.msra.mxu0 %v111_v5  ;;  %v105_v11 = vld [vmem:[%s429_s3 + $0x40] sm:$0xff]  ;;  %v104_v12 = vld [vmem:[%s429_s3 + $0x38] sm:$0xff]  ;;  %v103_v13 = vld [vmem:[%s429_s3 + $0x30] sm:$0xff] }
   0x7   :  { %224 = vmatpush.msra.mxu2 %v111_v5  ;;  %v102_v14 = vld [vmem:[%s429_s3 + $0x28] sm:$0xff]  ;;  %v101_v15 = vld [vmem:[%s429_s3 + $0x20] sm:$0xff]  ;;  %v100_v16 = vld [vmem:[%s429_s3 + $0x18] sm:$0xff] }
   0x8   :  { %119 = vmatpush.msra.mxu0 %v110_v6  ;;  %v99_v17 = vld [vmem:[%s429_s3 + $0x10] sm:$0xff]  ;;  %v98_v19 = vld [vmem:[%s429_s3 + $0x8] sm:$0xff]  ;;  %v97_v21 = vld [vmem:[%s429_s3] sm:$0xff] }
   0x9   :  { %225 = vmatpush.msra.mxu2 %v110_v6  ;;  %v151_v33 = vld [vmem:[%s431_s5 + $0x38] sm:$0xff]  ;;  %v150_v34 = vld [vmem:[%s431_s5 + $0x30] sm:$0xff]  ;;  %v149_v36 = vld [vmem:[%s431_s5 + $0x28] sm:$0xff] }
   0xa   :  { %35 = vadd.xlane.f32.xlu0 %v330_v2  ;;  %120 = vmatpush.msra.mxu0 %v109_v7  ;;  %v148_v38 = vld [vmem:[%s431_s5 + $0x20] sm:$0xff]  ;;  %v147_v42 = vld [vmem:[%s431_s5 + $0x18] sm:$0xff]  ;;  %v145_v4 = vld [vmem:[%s431_s5 + $0x8] sm:$0xff] }
   0xb   :  { %226 = vmatpush.msra.mxu2 %v109_v7  ;;  %167 = vmatpush.msra.mxu1 %v151_v33  ;;  %v242_v50 = vld [vmem:[%s427_s1] ss:$0 sm:$0xff] }
   0xc   :  { %41 = vadd.xlane.f32.xlu1 %v38_v3  ;;  %121 = vmatpush.msra.mxu0 %v108_v8  ;;  %v243_v54 = vld [vmem:[%s428_s2] ss:$0 sm:$0xff]  ;;  %v146_v3 = vld [vmem:[%s431_s5 + $0x10] sm:$0xff] }
   0xd   :  { %227 = vmatpush.msra.mxu2 %v108_v8  ;;  %168 = vmatpush.msra.mxu1 %v150_v34  ;;  %v144_v5 = vld [vmem:[%s431_s5] sm:$0xff]  ;;  %s276_s5 = smov [#allocation4]  }
   0xe   :  { %122 = vmatpush.msra.mxu0 %v107_v9  ;;  %v244_v6 = vld [vmem:[%s430_s4] ss:$0 sm:$0xff]  ;;  %s207_s4 = sshll.u32 %s276_s5, 4  ;;  %s208_s4 = int_to_ptr.vmem [resolvable:$true] %s207_s4 }
   0xf   :  { %228 = vmatpush.msra.mxu2 %v107_v9  ;;  %169 = vmatpush.msra.mxu1 %v149_v36 }
  0x10   :  { %123 = vmatpush.msra.mxu0 %v106_v10 }
  0x11   :  { %229 = vmatpush.msra.mxu2 %v106_v10  ;;  %170 = vmatpush.msra.mxu1 %v148_v38 }
  0x12   :  { %124 = vmatpush.msra.mxu0 %v105_v11 }
  0x13   :  { %230 = vmatpush.msra.mxu2 %v105_v11  ;;  %171 = vmatpush.msra.mxu1 %v147_v42 }
  0x14   :  { %125 = vmatpush.msra.mxu0 %v104_v12 }
  0x15   :  { %231 = vmatpush.msra.mxu2 %v104_v12  ;;  %172 = vmatpush.msra.mxu1 %v146_v3 }
  0x16   :  { %126 = vmatpush.msra.mxu0 %v103_v13 }
  0x17   :  { %232 = vmatpush.msra.mxu2 %v103_v13  ;;  %173 = vmatpush.msra.mxu1 %v145_v4  ;;  %v245_v13 = vld [vmem:[%s432_s6] ss:$0 sm:$0xff]  ;;  %s278_s6 = smov 8  }
  0x18   :  { %127 = vmatpush.msra.mxu0 %v102_v14 }
  0x19   :  { %233 = vmatpush.msra.mxu2 %v102_v14  ;;  %174 = vmatpush.msra.mxu1 %v144_v5 }
  0x1a   :  { %128 = vmatpush.msra.mxu0 %v101_v15 }
  0x1b   :  { %234 = vmatpush.msra.mxu2 %v101_v15 }
  0x1c   :  { %129 = vmatpush.msra.mxu0 %v100_v16 }
  0x1d   :  { %235 = vmatpush.msra.mxu2 %v100_v16 }
  0x1e   :  { %130 = vmatpush.msra.mxu0 %v99_v17 }
  0x1f   :  { %236 = vmatpush.msra.mxu2 %v99_v17 }
  0x20   :  { %131 = vmatpush.msra.mxu0 %v98_v19 }
  0x21   :  { %237 = vmatpush.msra.mxu2 %v98_v19 }
  0x22   :  { %132 = vmatpush.msra.mxu0 %v97_v21 }
  0x23   :  { %238 = vmatpush.msra.mxu2 %v97_v21 }
  0x75   :  { %v34_v18 = vpop.xlane.xlu0 %33 }
  0x76   :  { %v43_v20 = vmul.f32 0.03125, %v34_v18 }
  0x77   :  { %v40_v22 = vpop.xlane.xlu1 %39 }
  0x78   :  { %v47_v23 = vmul.f32 %v43_v20, %v43_v20  ;;  %v45_v24 = vmul.f32 0.03125, %v40_v22  ;;  %v53_v48 = vsub.f32 %v322_v0, %v43_v20 }
  0x7a   :  { %v49_v25 = vsub.f32 %v45_v24, %v47_v23 }
  0x7c   :  { %v51_v26 = vmax.f32 %v49_v25, 0.0 }
  0x7d   :  { %v36_v27 = vpop.xlane.xlu0 %35 }
  0x7e   :  { %v55_v28 = vadd.f32 1e-12, %v51_v26  ;;  %v44_v29 = vmul.f32 0.03125, %v36_v27 }
  0x7f   :  { %v42_v30 = vpop.xlane.xlu1 %41 }
  0x80   :  { %246 = vrsqrt.f32 %v55_v28  ;;  %v48_v31 = vmul.f32 %v44_v29, %v44_v29  ;;  %v46_v32 = vmul.f32 0.03125, %v42_v30  ;;  %vm63_vm1 = vweird.f32 %v55_v28 }
  0x81   :  { %v54_v60 = vsub.f32 %v330_v2, %v44_v29 }
  0x82   :  { %v50_v35 = vsub.f32 %v46_v32, %v48_v31 }
  0x84   :  { %v52_v37 = vmax.f32 %v50_v35, 0.0 }
  0x86   :  { %v247_v39 = vpop.eup %246  ;;  %v56_v41 = vadd.f32 1e-12, %v52_v37 }
  0x87   :  { %v58_v40 = vmul.f32 %v247_v39, %v55_v28  ;;  %vm64_vm0 = vweird.f32 %v247_v39 }
  0x88   :  { %248 = vrsqrt.f32 %v56_v41  ;;  %vm65_vm2 = vmor %vm63_vm1, %vm64_vm0  ;;  %vm73_vm4 = vweird.f32 %v56_v41 }
  0x89   :  { %v59_v43 = vmul.f32 %v247_v39, %v58_v40 }
  0x8b   :  { %v60_v44 = vmul.f32 0.5, %v59_v43 }
  0x8d   :  { %v61_v45 = vsub.f32 1.5, %v60_v44 }
  0x8e   :  { %v249_v46 = vpop.eup %248 }
  0x8f   :  { %v62_v47 = vmul.f32 %v247_v39, %v61_v45  ;;  %v68_v49 = vmul.f32 %v249_v46, %v56_v41  ;;  %vm74_vm3 = vweird.f32 %v249_v46 }
  0x90   :  { %vm75_vm5 = vmor %vm73_vm4, %vm74_vm3 }
  0x91   :  { %v66_v51 = vsel %vm65_vm2, %v247_v39, %v62_v47  ;;  %v69_v52 = vmul.f32 %v249_v46, %v68_v49 }
  0x92   :  { %v77_v53 = vmul.f32 %v66_v51, %v53_v48 }
  0x93   :  { %v70_v55 = vmul.f32 0.5, %v69_v52 }
  0x94   :  { %v83_v56 = vmul.f32 %v242_v50, %v77_v53 }
  0x95   :  { %v71_v57 = vsub.f32 1.5, %v70_v55 }
  0x96   :  { %v89_v58 = vadd.f32 %v243_v54, %v83_v56 }
  0x97   :  { %v72_v59 = vmul.f32 %v249_v46, %v71_v57 }
  0x98   :  { %133 = vmatmul.f32.vlgmr.msra.gmra.mxu0 %v89_v58 }
  0x99   :  { %v76_v61 = vsel %vm75_vm5, %v249_v46, %v72_v59 }
  0x9a   :  { %v78_v62 = vmul.f32 %v76_v61, %v54_v60 }
  0x9c   :  { %v84_v63 = vmul.f32 %v242_v50, %v78_v62 }
  0x9e   :  { %v90_v1 = vadd.f32 %v243_v54, %v84_v63 }
  0xa0   :  { %136 = vmatmul.f32.vlgmr.msra.gmra.mxu2 %v90_v1 }
 0x115   :  { %v134_v7 = vpop.f32.mrf.mxu0 }
 0x116   :  { %v135_v8 = vadd.f32 %v244_v6, %v134_v7 }
 0x118   :  { %v140_v9 = vmax.f32 %v135_v8, 0.0 }
 0x11a   :  { %221 = vmatmul.msk.f32.vlgmr.msra.gmra.mxu1 %vm152_vm6, %v140_v9 }
 0x123   :  { %v137_v10 = vpop.f32.mrf.mxu2 }
 0x124   :  { %v138_v11 = vadd.f32 %v244_v6, %v137_v10 }
 0x126   :  { %v141_v12 = vmax.f32 %v138_v11, 0.0 }
 0x128   :  { %222 = vmatmul.msk.f32.gmra.mxu1 %vm152_vm6, %v141_v12 }
 0x197   :  { %v176_v14 = vpop.f32.mrf.mxu1 }
 0x198   :  { %v195_v15 = vadd.f32 %v245_v13, %v176_v14 }
 0x19a   :  { %v199_v16 = vadd.f32 %v195_v15, %v322_v0 }
 0x19c   :  { %201 = vst [vmem:[#allocation4] sm:$0xff] %v199_v16 }
 0x1a5   :  { %v179_v17 = vpop.f32.mrf.mxu1 }
 0x1a6   :  { %v196_v18 = vadd.f32 %v245_v13, %v179_v17 }
 0x1a8   :  { %v200_v19 = vadd.f32 %v196_v18, %v330_v2 }
 0x1aa   :  { %202 = vst [vmem:[#allocation4 + $0x8] sm:$0xff] %v200_v19 }
 0x1ab   :  { %215 = dma.vmem_to_hbm [thread:$0]  %s208_s4, 256, %s210_s11, [#allocation5], %s277_s12, %s277_s12, %s278_s6  }
 0x1ac   :  { %274 = dma.done.wait [#allocation5], 256  }
 0x1ad   :  { %275 = vsyncadd [#allocation5], 4294967040 }
 0x1ae   :  { %220 = vsyncpa [#allocation5], 1 }

</bundles_post_ra>
